<compile_context>
chip_gen: v7x
topology: tpu7x:2x2x1
jax: 0.10.0
libtpu: 0.0.40
codegen_flags: <defaults>
</compile_context>

<pallas_src>
import jax
import jax.numpy as jnp
from jax.experimental import pallas as pl
from jax.experimental.pallas import tpu as pltpu

# ----- module hyper-parameters (small shapes consistent with the PyTorch module) -----
B = 2             # batch
C = 4             # width (in/out channels of every residual block)
L = 16            # sequence length (power of two -> cheap in-kernel position mask)
DEPTH = 2         # block_depth
K = 3             # block_kernel
PAD = 1           # block_padding (keeps length, so the residual add is well-defined)
BL = B * L        # folded lane extent
NEG_SLOPE = 0.01  # F.leaky_relu default negative_slope


def bottleneck_kernel(x_ref, w_ref, b_ref, out_ref, pad_ref):
    """Whole problem lives in VMEM; one invocation.

    x_ref  : (C, B*L)            activations, batch folded into the lane axis
    w_ref  : (DEPTH, K, C, C)    conv weights, tap-major: w_ref[d, j] == W_d[:, :, j]
    b_ref  : (DEPTH, C, 1)       conv biases
    out_ref: (C, B*L)            output activations
    pad_ref: (C, B*L + 2*PAD)    zero-padded scratch used to form shifted conv taps
    """
    # Zero the scratch once; the boundary pad columns stay zero for every depth.
    pad_ref[...] = jnp.zeros_like(pad_ref)

    # Per-segment position (t mod L) of every lane; hoisted out of the depth loop.
    lane = jax.lax.broadcasted_iota(jnp.int32, (C, BL), 1)
    pos = jnp.bitwise_and(lane, L - 1)  # L is a power of two
    valid = {}
    for j in range(K):
        off = j - PAD
        if off != 0:
            valid[j] = jnp.logical_and(pos + off >= 0, pos + off < L)

    act = x_ref[...]  # (C, B*L)
    for d in range(DEPTH):
        h = jnp.where(act > 0, act, NEG_SLOPE * act)      # leaky_relu
        pad_ref[:, PAD:PAD + BL] = h                      # center; pads stay zero

        y = jnp.zeros((C, BL), dtype=jnp.float32)
        for j in range(K):
            if j == PAD:                                  # centered tap: no shift
                tap = h
            else:
                tap = pad_ref[:, j:j + BL]                # shifted by (j - PAD) lanes
                tap = jnp.where(valid[j], tap, 0.0)       # mask batch/edge leakage
            y = y + jnp.dot(w_ref[d, j], tap,
                            preferred_element_type=jnp.float32)
        act = act + y + b_ref[d]                          # conv bias + residual

    out_ref[...] = act


@jax.jit
def bottleneck_forward(x, wb, bb):
    """Pallas forward for Bottleneck: returns blocks(x), shape (B, C, L)."""
    assert L > 0 and (L & (L - 1)) == 0, "L must be a power of two for the lane mask"

    # Fold batch into the lane axis: (B, C, L) -> (C, B*L).
    x_folded = jnp.transpose(x, (1, 0, 2)).reshape(C, BL)

    # Tap-major weights for clean static leading-axis indexing in the kernel.
    w_k = jnp.transpose(wb, (0, 3, 1, 2))   # (DEPTH, K, C, C)
    b_k = bb[..., None]                     # (DEPTH, C, 1)

    out_folded = pl.pallas_call(
        bottleneck_kernel,
        out_shape=jax.ShapeDtypeStruct((C, BL), jnp.float32),
        scratch_shapes=[pltpu.VMEM((C, BL + 2 * PAD), jnp.float32)],
    )(x_folded, w_k, b_k)

    # Unfold: (C, B*L) -> (B, C, L).
    return jnp.transpose(out_folded.reshape(C, B, L), (1, 0, 2))


# ------------------------- pure-JAX reference -------------------------
def _conv1d_ref(x, w, b, stride, padding):
    out = jax.lax.conv_general_dilated(
        x, w, window_strides=(stride,), padding=[(padding, padding)],
        dimension_numbers=("NCH", "OIH", "NCH"))
    return out + b[None, :, None]


def ref_forward(x, wb, bb):
    out = x
    for d in range(DEPTH):
        h = jnp.where(out > 0, out, NEG_SLOPE * out)
        out = out + _conv1d_ref(h, wb[d], bb[d], 1, PAD)
    return out


if __name__ == "__main__":
    key = jax.random.PRNGKey(0)
    kx, kwb, kbb = jax.random.split(key, 3)

    x = jax.random.normal(kx, (B, C, L), dtype=jnp.float32)
    # Deterministic synthetic parameters (nn.Conv1d weight/bias shapes per block):
    wb = jax.random.normal(kwb, (DEPTH, C, C, K), dtype=jnp.float32) * 0.2
    bb = jax.random.normal(kbb, (DEPTH, C), dtype=jnp.float32) * 0.1

    out = bottleneck_forward(x, wb, bb)
    jax.block_until_ready(out)

    ref = ref_forward(x, wb, bb)
    assert out.shape == (B, C, L)
    assert jnp.allclose(out, ref, rtol=1e-3, atol=1e-3), "Bottleneck output mismatch"

    print("KERNEL_OK")
</pallas_src>

<mosaic_0001>
module attributes {stable_mosaic.version = 11 : i64} {
  func.func @bottleneck_kernel(%arg0: memref<4x32xf32, #tpu.memory_space<vmem>>, %arg1: memref<2x3x4x4xf32, #tpu.memory_space<vmem>>, %arg2: memref<2x4x1xf32, #tpu.memory_space<vmem>>, %arg3: memref<4x32xf32, #tpu.memory_space<vmem>>, %arg4: memref<4x34xf32, #tpu.memory_space<vmem>>) attributes {dimension_semantics = [], scalar_prefetch = 0 : i64, scratch_operands = 1 : i64, tpu.core_type = #tpu.core_type<tc>} {
    %cst = arith.constant 0.000000e+00 : f32
    %0 = vector.broadcast %cst : f32 to vector<4x34xf32>
    %c0 = arith.constant 0 : index
    %c0_0 = arith.constant 0 : index
    %1 = vector.load %arg4[%c0, %c0_0] : memref<4x34xf32, #tpu.memory_space<vmem>>, vector<4x34xf32>
    tpu.vector_store %arg4[%c0, %c0_0], %0 {strides = array<i32>} : memref<4x34xf32, #tpu.memory_space<vmem>>, vector<4x34xf32>,
    %2 = tpu.iota {dimensions = array<i32: 1>} : vector<4x32xi32>
    %c15_i32 = arith.constant 15 : i32
    %3 = vector.broadcast %c15_i32 : i32 to vector<4x32xi32>
    %4 = arith.andi %2, %3 : vector<4x32xi32>
    %c-1_i32 = arith.constant -1 : i32
    %5 = vector.broadcast %c-1_i32 : i32 to vector<4x32xi32>
    %6 = arith.addi %4, %5 : vector<4x32xi32>
    %c0_i32 = arith.constant 0 : i32
    %7 = vector.broadcast %c0_i32 : i32 to vector<4x32xi32>
    %8 = arith.cmpi sge, %6, %7 : vector<4x32xi32>
    %c-1_i32_1 = arith.constant -1 : i32
    %9 = vector.broadcast %c-1_i32_1 : i32 to vector<4x32xi32>
    %10 = arith.addi %4, %9 : vector<4x32xi32>
    %c16_i32 = arith.constant 16 : i32
    %11 = vector.broadcast %c16_i32 : i32 to vector<4x32xi32>
    %12 = arith.cmpi slt, %10, %11 : vector<4x32xi32>
    %13 = arith.andi %8, %12 : vector<4x32xi1>
    %c1_i32 = arith.constant 1 : i32
    %14 = vector.broadcast %c1_i32 : i32 to vector<4x32xi32>
    %15 = arith.addi %4, %14 : vector<4x32xi32>
    %c0_i32_2 = arith.constant 0 : i32
    %16 = vector.broadcast %c0_i32_2 : i32 to vector<4x32xi32>
    %17 = arith.cmpi sge, %15, %16 : vector<4x32xi32>
    %c1_i32_3 = arith.constant 1 : i32
    %18 = vector.broadcast %c1_i32_3 : i32 to vector<4x32xi32>
    %19 = arith.addi %4, %18 : vector<4x32xi32>
    %c16_i32_4 = arith.constant 16 : i32
    %20 = vector.broadcast %c16_i32_4 : i32 to vector<4x32xi32>
    %21 = arith.cmpi slt, %19, %20 : vector<4x32xi32>
    %22 = arith.andi %17, %21 : vector<4x32xi1>
    %c0_5 = arith.constant 0 : index
    %c0_6 = arith.constant 0 : index
    %23 = vector.load %arg0[%c0_5, %c0_6] : memref<4x32xf32, #tpu.memory_space<vmem>>, vector<4x32xf32>
    %cst_7 = arith.constant 0.000000e+00 : f32
    %24 = vector.broadcast %cst_7 : f32 to vector<4x32xf32>
    %25 = arith.cmpf ogt, %23, %24 : vector<4x32xf32>
    %cst_8 = arith.constant 0.00999999977 : f32
    %26 = vector.broadcast %cst_8 : f32 to vector<4x32xf32>
    %27 = arith.mulf %26, %23 : vector<4x32xf32>
    %28 = arith.select %25, %23, %27 : vector<4x32xi1>, vector<4x32xf32>
    %c0_9 = arith.constant 0 : index
    %c1 = arith.constant 1 : index
    %29 = vector.load %arg4[%c0_9, %c1] : memref<4x34xf32, #tpu.memory_space<vmem>>, vector<4x32xf32>
    tpu.vector_store %arg4[%c0_9, %c1], %28 {strides = array<i32>} : memref<4x34xf32, #tpu.memory_space<vmem>>, vector<4x32xf32>,
    %cst_10 = arith.constant 0.000000e+00 : f32
    %30 = vector.broadcast %cst_10 : f32 to vector<4x32xf32>
    %c0_11 = arith.constant 0 : index
    %c0_12 = arith.constant 0 : index
    %31 = vector.load %arg4[%c0_11, %c0_12] : memref<4x34xf32, #tpu.memory_space<vmem>>, vector<4x32xf32>
    %cst_13 = arith.constant 0.000000e+00 : f32
    %32 = vector.broadcast %cst_13 : f32 to vector<4x32xf32>
    %33 = arith.select %13, %31, %32 : vector<4x32xi1>, vector<4x32xf32>
    %c0_14 = arith.constant 0 : index
    %c0_15 = arith.constant 0 : index
    %c0_16 = arith.constant 0 : index
    %c0_17 = arith.constant 0 : index
    %34 = vector.load %arg1[%c0_14, %c0_15, %c0_16, %c0_17] : memref<2x3x4x4xf32, #tpu.memory_space<vmem>>, vector<1x1x4x4xf32>
    %35 = vector.shape_cast %34 : vector<1x1x4x4xf32> to vector<4x4xf32>
    %cst_18 = arith.constant dense<0.000000e+00> : vector<4x32xf32>
    %36 = tpu.matmul %35, %33, %cst_18 {dimension_numbers = #tpu.dot_dimension_numbers<[1], [0], [0], [1], [0, 0, 1, 1], [], []>} : vector<4x4xf32>, vector<4x32xf32>, vector<4x32xf32> -> vector<4x32xf32>
    %37 = arith.addf %30, %36 : vector<4x32xf32>
    %c0_19 = arith.constant 0 : index
    %c1_20 = arith.constant 1 : index
    %c0_21 = arith.constant 0 : index
    %c0_22 = arith.constant 0 : index
    %38 = vector.load %arg1[%c0_19, %c1_20, %c0_21, %c0_22] : memref<2x3x4x4xf32, #tpu.memory_space<vmem>>, vector<1x1x4x4xf32>
    %39 = vector.shape_cast %38 : vector<1x1x4x4xf32> to vector<4x4xf32>
    %cst_23 = arith.constant dense<0.000000e+00> : vector<4x32xf32>
    %40 = tpu.matmul %39, %28, %cst_23 {dimension_numbers = #tpu.dot_dimension_numbers<[1], [0], [0], [1], [0, 0, 1, 1], [], []>} : vector<4x4xf32>, vector<4x32xf32>, vector<4x32xf32> -> vector<4x32xf32>
    %41 = arith.addf %37, %40 : vector<4x32xf32>
    %c0_24 = arith.constant 0 : index
    %c2 = arith.constant 2 : index
    %42 = vector.load %arg4[%c0_24, %c2] : memref<4x34xf32, #tpu.memory_space<vmem>>, vector<4x32xf32>
    %cst_25 = arith.constant 0.000000e+00 : f32
    %43 = vector.broadcast %cst_25 : f32 to vector<4x32xf32>
    %44 = arith.select %22, %42, %43 : vector<4x32xi1>, vector<4x32xf32>
    %c0_26 = arith.constant 0 : index
    %c2_27 = arith.constant 2 : index
    %c0_28 = arith.constant 0 : index
    %c0_29 = arith.constant 0 : index
    %45 = vector.load %arg1[%c0_26, %c2_27, %c0_28, %c0_29] : memref<2x3x4x4xf32, #tpu.memory_space<vmem>>, vector<1x1x4x4xf32>
    %46 = vector.shape_cast %45 : vector<1x1x4x4xf32> to vector<4x4xf32>
    %cst_30 = arith.constant dense<0.000000e+00> : vector<4x32xf32>
    %47 = tpu.matmul %46, %44, %cst_30 {dimension_numbers = #tpu.dot_dimension_numbers<[1], [0], [0], [1], [0, 0, 1, 1], [], []>} : vector<4x4xf32>, vector<4x32xf32>, vector<4x32xf32> -> vector<4x32xf32>
    %48 = arith.addf %41, %47 : vector<4x32xf32>
    %49 = arith.addf %23, %48 : vector<4x32xf32>
    %c0_31 = arith.constant 0 : index
    %c0_32 = arith.constant 0 : index
    %c0_33 = arith.constant 0 : index
    %50 = vector.load %arg2[%c0_31, %c0_32, %c0_33] : memref<2x4x1xf32, #tpu.memory_space<vmem>>, vector<1x4x1xf32>
    %51 = vector.shape_cast %50 : vector<1x4x1xf32> to vector<4x1xf32>
    %52 = vector.broadcast %51 : vector<4x1xf32> to vector<4x32xf32>
    %53 = arith.addf %49, %52 : vector<4x32xf32>
    %cst_34 = arith.constant 0.000000e+00 : f32
    %54 = vector.broadcast %cst_34 : f32 to vector<4x32xf32>
    %55 = arith.cmpf ogt, %53, %54 : vector<4x32xf32>
    %cst_35 = arith.constant 0.00999999977 : f32
    %56 = vector.broadcast %cst_35 : f32 to vector<4x32xf32>
    %57 = arith.mulf %56, %53 : vector<4x32xf32>
    %58 = arith.select %55, %53, %57 : vector<4x32xi1>, vector<4x32xf32>
    %c0_36 = arith.constant 0 : index
    %c1_37 = arith.constant 1 : index
    %59 = vector.load %arg4[%c0_36, %c1_37] : memref<4x34xf32, #tpu.memory_space<vmem>>, vector<4x32xf32>
    tpu.vector_store %arg4[%c0_36, %c1_37], %58 {strides = array<i32>} : memref<4x34xf32, #tpu.memory_space<vmem>>, vector<4x32xf32>,
    %cst_38 = arith.constant 0.000000e+00 : f32
    %60 = vector.broadcast %cst_38 : f32 to vector<4x32xf32>
    %c0_39 = arith.constant 0 : index
    %c0_40 = arith.constant 0 : index
    %61 = vector.load %arg4[%c0_39, %c0_40] : memref<4x34xf32, #tpu.memory_space<vmem>>, vector<4x32xf32>
    %cst_41 = arith.constant 0.000000e+00 : f32
    %62 = vector.broadcast %cst_41 : f32 to vector<4x32xf32>
    %63 = arith.select %13, %61, %62 : vector<4x32xi1>, vector<4x32xf32>
    %c1_42 = arith.constant 1 : index
    %c0_43 = arith.constant 0 : index
    %c0_44 = arith.constant 0 : index
    %c0_45 = arith.constant 0 : index
    %64 = vector.load %arg1[%c1_42, %c0_43, %c0_44, %c0_45] : memref<2x3x4x4xf32, #tpu.memory_space<vmem>>, vector<1x1x4x4xf32>
    %65 = vector.shape_cast %64 : vector<1x1x4x4xf32> to vector<4x4xf32>
    %cst_46 = arith.constant dense<0.000000e+00> : vector<4x32xf32>
    %66 = tpu.matmul %65, %63, %cst_46 {dimension_numbers = #tpu.dot_dimension_numbers<[1], [0], [0], [1], [0, 0, 1, 1], [], []>} : vector<4x4xf32>, vector<4x32xf32>, vector<4x32xf32> -> vector<4x32xf32>
    %67 = arith.addf %60, %66 : vector<4x32xf32>
    %c1_47 = arith.constant 1 : index
    %c1_48 = arith.constant 1 : index
    %c0_49 = arith.constant 0 : index
    %c0_50 = arith.constant 0 : index
    %68 = vector.load %arg1[%c1_47, %c1_48, %c0_49, %c0_50] : memref<2x3x4x4xf32, #tpu.memory_space<vmem>>, vector<1x1x4x4xf32>
    %69 = vector.shape_cast %68 : vector<1x1x4x4xf32> to vector<4x4xf32>
    %cst_51 = arith.constant dense<0.000000e+00> : vector<4x32xf32>
    %70 = tpu.matmul %69, %58, %cst_51 {dimension_numbers = #tpu.dot_dimension_numbers<[1], [0], [0], [1], [0, 0, 1, 1], [], []>} : vector<4x4xf32>, vector<4x32xf32>, vector<4x32xf32> -> vector<4x32xf32>
    %71 = arith.addf %67, %70 : vector<4x32xf32>
    %c0_52 = arith.constant 0 : index
    %c2_53 = arith.constant 2 : index
    %72 = vector.load %arg4[%c0_52, %c2_53] : memref<4x34xf32, #tpu.memory_space<vmem>>, vector<4x32xf32>
    %cst_54 = arith.constant 0.000000e+00 : f32
    %73 = vector.broadcast %cst_54 : f32 to vector<4x32xf32>
    %74 = arith.select %22, %72, %73 : vector<4x32xi1>, vector<4x32xf32>
    %c1_55 = arith.constant 1 : index
    %c2_56 = arith.constant 2 : index
    %c0_57 = arith.constant 0 : index
    %c0_58 = arith.constant 0 : index
    %75 = vector.load %arg1[%c1_55, %c2_56, %c0_57, %c0_58] : memref<2x3x4x4xf32, #tpu.memory_space<vmem>>, vector<1x1x4x4xf32>
    %76 = vector.shape_cast %75 : vector<1x1x4x4xf32> to vector<4x4xf32>
    %cst_59 = arith.constant dense<0.000000e+00> : vector<4x32xf32>
    %77 = tpu.matmul %76, %74, %cst_59 {dimension_numbers = #tpu.dot_dimension_numbers<[1], [0], [0], [1], [0, 0, 1, 1], [], []>} : vector<4x4xf32>, vector<4x32xf32>, vector<4x32xf32> -> vector<4x32xf32>
    %78 = arith.addf %71, %77 : vector<4x32xf32>
    %79 = arith.addf %53, %78 : vector<4x32xf32>
    %c1_60 = arith.constant 1 : index
    %c0_61 = arith.constant 0 : index
    %c0_62 = arith.constant 0 : index
    %80 = vector.load %arg2[%c1_60, %c0_61, %c0_62] : memref<2x4x1xf32, #tpu.memory_space<vmem>>, vector<1x4x1xf32>
    %81 = vector.shape_cast %80 : vector<1x4x1xf32> to vector<4x1xf32>
    %82 = vector.broadcast %81 : vector<4x1xf32> to vector<4x32xf32>
    %83 = arith.addf %79, %82 : vector<4x32xf32>
    %c0_63 = arith.constant 0 : index
    %c0_64 = arith.constant 0 : index
    %84 = vector.load %arg3[%c0_63, %c0_64] : memref<4x32xf32, #tpu.memory_space<vmem>>, vector<4x32xf32>
    tpu.vector_store %arg3[%c0_63, %c0_64], %83 {strides = array<i32>} : memref<4x32xf32, #tpu.memory_space<vmem>>, vector<4x32xf32>,
    return
  }
}

</mosaic_0001>

<bundles_post_ra>
// kernel: bottleneck_forward.1
= control target key start
LH: loop header
LB: loop body
LE: loop exit
PB: predicated region body
PF: predicated region fallthrough
CT: control target
= control target key end

     0   :  { %vm14_vm0 = vcmask 273408   ;;  %v618_v1 = vmov 0.0   ;;  %vm619_vm2 = vmmov 0   ;;  %vm42_vm3 = vcmask 31744   ;;  %s622_s20 = smov 126   ;;  %s714_s0 = inlined_call_operand.vmem [shape: f32[4,32], index: 0, kind: input, shape index: {}]   ;;  %s715_s1 = inlined_call_operand.vmem [shape: f32[2,3,4,4], index: 1, kind: input, shape index: {}]   ;;  %s716_s2 = inlined_call_operand.vmem [shape: f32[2,4,1], index: 2, kind: input, shape index: {}]   ;;  %s717_s3 = inlined_call_operand.vmem [shape: f32[4,32], index: 3, kind: output, shape index: {}]  }
   0x1   :  { %v27_v0 = vld [vmem:[%s714_s0] sm:$0xf]  ;;  %15 = vst.msk [vmem:[#allocation2] sm:$0xf] %vm14_vm0, %v618_v1  ;;  %586 = vmatprep.subr.mxu1 %v618_v1  ;;  %581 = vmatprep.subr.mxu0 %v618_v1  ;;  %v551_v3 = vld [vmem:[%s715_s1 + $0x4] sm:$0xf]  ;;  %v16_v5 = vlaneseq }
   0x2   :  { %vm28_vm1 = vcmp.gt.f32.partialorder %v27_v0, 0.0  ;;  %v29_v2 = vmul.f32 0.01, %v27_v0  ;;  %583 = vmatprep.mubr.msk.f32.mxu0 %vm619_vm2, %v618_v1  ;;  %588 = vmatprep.mubr.msk.f32.mxu1 %vm619_vm2, %v618_v1  ;;  %vm46_vm4 = vcmask 1043456   ;;  %s620_s0 = smov 1   ;;  %vm35_vm5 = vcmask 265224  }
   0x3   :  { %v17_v6 = vand.u32 127, %v16_v5  ;;  %v621_v8 = vmov 0   ;;  %v280_v9 = vld [vmem:[%s716_s2] sm:$0xf]  ;;  %v556_v19 = vld [vmem:[%s715_s1 + $0x8] sm:$0xf] }
   0x4   :  { %v30_v4 = vsel %vm28_vm1, %v27_v0, %v29_v2  ;;  %616 = vset.pattern.permute.xlu1 %v621_v8  ;;  %617 = vset.pattern.permute.xlu0 %v621_v8  ;;  %v39_v13 = vld [vmem:[%s715_s1] sm:$0xf]  ;;  %v568_v32 = vld [vmem:[%s716_s2 + $0x4] sm:$0xf]  ;;  %v560_v33 = vld [vmem:[%s715_s1 + $0x10] sm:$0xf] }
   0x5   :  { %32 = vrot.lane.b32.xlu0 %v30_v4, %s620_s0  ;;  %582 = vmatpush3.msk.msra.mxu0 %vm46_vm4, %v30_v4  ;;  %v18_v7 = vand.u32 15, %v17_v6  ;;  %v559_v36 = vld [vmem:[%s715_s1 + $0xc] sm:$0xf]  ;;  %v565_v41 = vld [vmem:[%s715_s1 + $0x14] sm:$0xf]  ;;  %vm545_vm9 = vcmask 257024  }
   0x6   :  { %584 = vmatmul.mubr.msk.f32.vlgmr.msra.gmra.mrb[0].mxu0 %vm42_vm3, %v551_v3  ;;  %591 = vmatprep.subr.mxu0 %v618_v1 }
   0x7   :  { %593 = vmatprep.mubr.msk.f32.mxu0 %vm619_vm2, %v618_v1  ;;  %283 = vperm.xlu1 %616, %v280_v9   ;;  %v19_v11 = vadd.s32 4294967295, %v18_v7  ;;  %v23_v17 = vadd.s32 1, %v18_v7 }
   0x9   :  { %vm20_vm6 = vcmp.ge.s32.totalorder %v19_v11, 0  ;;  %vm25_vm7 = vcmp.lt.s32.totalorder %v23_v17, 16 }
  0x77   :  { %v33_v10 = vpop.permute.xlu0 %32 }
  0x78   :  { %36 = vst.msk [vmem:[#allocation2] sm:$0xf] %vm35_vm5, %v33_v10 }
  0x7f   :  { %v37_v12 = vld [vmem:[#allocation2] sm:$0xf] }
  0x80   :  { %196 = vrot.lane.b32.xlu0 %v37_v12, %s622_s20  ;;  %v38_v14 = vsel %vm20_vm6, %v37_v12, 0.0 }
  0x81   :  { %587 = vmatpush3.msk.msra.mxu1 %vm46_vm4, %v38_v14 }
  0x82   :  { %589 = vmatmul.mubr.msk.f32.vlgmr.msra.gmra.mrb[0].mxu1 %vm42_vm3, %v39_v13  ;;  %596 = vmatprep.subr.mxu1 %v618_v1 }
  0x83   :  { %598 = vmatprep.mubr.msk.f32.mxu1 %vm619_vm2, %v618_v1 }
  0x86   :  { %v284_v27 = vpop.permute.xlu1 %283 }
  0xd9   :  { %v115_v15 = vpop.f32.mrb[0].mxu0 }
  0xda   :  { %v585_v16 = vpop.f32.mrb[1].mxu0 }
  0xf2   :  { %v197_v18 = vpop.permute.xlu0 %196 }
  0xf3   :  { %v199_v20 = vsel %vm25_vm7, %v197_v18, 0.0 }
  0xf4   :  { %592 = vmatpush3.msk.msra.mxu0 %vm46_vm4, %v199_v20 }
  0xf5   :  { %594 = vmatmul.mubr.msk.f32.vlgmr.msra.gmra.mrb[2].mxu0 %vm42_vm3, %v556_v19  ;;  %601 = vmatprep.subr.mxu0 %v618_v1 }
  0xf6   :  { %603 = vmatprep.mubr.msk.f32.mxu0 %vm619_vm2, %v618_v1 }
 0x155   :  { %v191_v21 = vpop.f32.mrb[0].mxu1 }
 0x156   :  { %v192_v22 = vadd.f32 %v191_v21, %v115_v15  ;;  %v590_v23 = vpop.f32.mrb[1].mxu1 }
 0x1c8   :  { %v274_v24 = vpop.f32.mrb[2].mxu0 }
 0x1c9   :  { %v278_v25 = vadd.f32 %v274_v24, %v192_v22  ;;  %v595_v26 = vpop.f32.mrb[3].mxu0 }
 0x1cb   :  { %v279_v28 = vadd.f32 %v278_v25, %v27_v0 }
 0x1cd   :  { %v286_v29 = vadd.f32 %v284_v27, %v279_v28 }
 0x1cf   :  { %vm287_vm8 = vcmp.gt.f32.partialorder %v286_v29, 0.0  ;;  %v288_v30 = vmul.f32 0.01, %v286_v29 }
 0x1d1   :  { %v289_v31 = vsel %vm287_vm8, %v286_v29, %v288_v30 }
 0x1d2   :  { %291 = vrot.lane.b32.xlu1 %v289_v31, %s620_s0  ;;  %597 = vmatpush3.msk.msra.mxu1 %vm46_vm4, %v289_v31 }
 0x1d3   :  { %606 = vmatprep.subr.mxu1 %v618_v1  ;;  %599 = vmatmul.mubr.msk.f32.vlgmr.msra.gmra.mrb[2].mxu1 %vm42_vm3, %v560_v33 }
 0x1d4   :  { %608 = vmatprep.mubr.msk.f32.mxu1 %vm619_vm2, %v618_v1 }
 0x1d6   :  { %541 = vperm.xlu1 %616, %v568_v32  }
 0x244   :  { %v292_v34 = vpop.permute.xlu1 %291 }
 0x245   :  { %294 = vst.msk [vmem:[#allocation2] sm:$0xf] %vm35_vm5, %v292_v34 }
 0x24c   :  { %v295_v35 = vld [vmem:[#allocation2] sm:$0xf] }
 0x24d   :  { %453 = vrot.lane.b32.xlu0 %v295_v35, %s622_s20  ;;  %v296_v37 = vsel %vm20_vm6, %v295_v35, 0.0 }
 0x24e   :  { %602 = vmatpush3.msk.msra.mxu0 %vm46_vm4, %v296_v37 }
 0x24f   :  { %604 = vmatmul.mubr.msk.f32.vlgmr.msra.gmra.mrb[4].mxu0 %vm42_vm3, %v559_v36 }
 0x255   :  { %v542_v50 = vpop.permute.xlu1 %541 }
 0x2a6   :  { %v372_v38 = vpop.f32.mrb[2].mxu1 }
 0x2a7   :  { %v600_v39 = vpop.f32.mrb[3].mxu1 }
 0x2bf   :  { %v454_v40 = vpop.permute.xlu0 %453 }
 0x2c0   :  { %v456_v42 = vsel %vm25_vm7, %v454_v40, 0.0 }
 0x2c1   :  { %607 = vmatpush3.msk.msra.mxu1 %vm46_vm4, %v456_v42 }
 0x2c2   :  { %609 = vmatmul.mubr.msk.f32.vlgmr.msra.gmra.mrb[4].mxu1 %vm42_vm3, %v565_v41 }
 0x322   :  { %v448_v43 = vpop.f32.mrb[4].mxu0 }
 0x323   :  { %v449_v44 = vadd.f32 %v448_v43, %v372_v38  ;;  %v605_v45 = vpop.f32.mrb[5].mxu0 }
 0x395   :  { %v531_v46 = vpop.f32.mrb[4].mxu1 }
 0x396   :  { %v535_v47 = vadd.f32 %v531_v46, %v449_v44  ;;  %v610_v48 = vpop.f32.mrb[5].mxu1 }
 0x398   :  { %v536_v49 = vadd.f32 %v535_v47, %v286_v29 }
 0x39a   :  { %v544_v51 = vadd.f32 %v542_v50, %v536_v49 }
 0x39c   :  { %546 = vst.msk [vmem:[%s717_s3] sm:$0xf] %vm545_vm9, %v544_v51 }

</bundles_post_ra>
